<compile_context>
chip_gen: v6e
topology: v6e:2x2x1
jax: 0.10.0
libtpu: 0.0.40
codegen_flags: <defaults>
</compile_context>

<pallas_src>
import functools

import jax
import jax.numpy as jnp
from jax.experimental import pallas as pl
from jax.experimental.pallas import tpu as pltpu

HIDDEN = 30


def _round_up(x, m):
    return (x + m - 1) // m * m


def cnet_kernel(s_ref, a_ref, slab_ref, o_ref, *, s_dim, a_dim,
                off_wa, off_bias, off_wo, off_bo):
    """Fused CNet forward on one batch tile.

    slab row layout (all static, 8-row-aligned starts):
      [0        : s_dim)        Ws^T                    (s_dim, H)
      [off_wa   : off_wa+a_dim) Wa^T                    (a_dim, H)
      [off_bias]                fused bias bs + ba      (1, H)
      [off_wo]                  Wo row                  (1, H)
      [off_bo, 0]               bo scalar
    """
    ws_t = slab_ref[0:s_dim, :]                       # (s_dim, H)
    wa_t = slab_ref[off_wa:off_wa + a_dim, :]         # (a_dim, H)
    bias = slab_ref[off_bias:off_bias + 1, :]         # (1, H)
    wo_row = slab_ref[off_wo:off_wo + 1, :]           # (1, H)
    bo = slab_ref[off_bo:off_bo + 1, 0:1]             # (1, 1)

    s = s_ref[...]                                    # (tb, s_dim)
    a = a_ref[...]                                    # (tb, a_dim)

    # fcs(s) + fca(a): two MXU pushes, accumulate in f32.
    h = (jnp.dot(s, ws_t, preferred_element_type=jnp.float32)
         + jnp.dot(a, wa_t, preferred_element_type=jnp.float32)
         + bias.astype(jnp.float32))
    net = jnp.maximum(h, 0.0)                         # relu(x + y), (tb, H)

    # Final Linear(30, 1), produced lane-dense: (1,H) x (tb,H)^T -> (1,tb).
    out_row = jax.lax.dot_general(
        wo_row.astype(jnp.float32), net,
        dimension_numbers=(((1,), (1,)), ((), ())),
        preferred_element_type=jnp.float32) + bo.astype(jnp.float32)

    o_ref[...] = out_row.astype(o_ref.dtype)          # (1, tb), lane-dense


def pack_params(params, dtype=jnp.float32):
    """One-time packing of PyTorch-convention weights into a VMEM slab.

    params: Ws (H, s_dim), bs (H,), Wa (H, a_dim), ba (H,), Wo (1, H), bo (1,)
    Returns (slab, meta) where meta holds the static row offsets.
    Use dtype=jnp.bfloat16 to halve weight/activation HBM bytes on v6e/v7x.
    """
    ws, bs = params["Ws"], params["bs"]
    wa, ba = params["Wa"], params["ba"]
    wo, bo = params["Wo"], params["bo"]
    h = ws.shape[0]
    s_dim = ws.shape[1]
    a_dim = wa.shape[1]

    off_wa = _round_up(s_dim, 8)
    off_bias = off_wa + _round_up(a_dim, 8)
    off_wo = off_bias + 8
    off_bo = off_wo + 8
    n_rows = off_bo + 8                               # multiple of 8

    slab = jnp.zeros((n_rows, h), jnp.float32)
    slab = slab.at[0:s_dim].set(ws.T)
    slab = slab.at[off_wa:off_wa + a_dim].set(wa.T)
    slab = slab.at[off_bias].set(bs + ba)             # fused bias
    slab = slab.at[off_wo].set(wo.reshape(h))
    slab = slab.at[off_bo, 0].set(bo.reshape(())[()])

    meta = dict(off_wa=off_wa, off_bias=off_bias, off_wo=off_wo, off_bo=off_bo)
    return slab.astype(dtype), meta


def cnet_forward(s, a, slab, meta, *, batch_tile=2048):
    """CNet forward.  s: (B, s_dim), a: (B, a_dim) -> (B, 1) float32."""
    b = s.shape[0]
    s_dim = s.shape[1]
    a_dim = a.shape[1]

    tb = min(batch_tile, _round_up(b, 8))
    b_pad = _round_up(b, tb)
    if b_pad != b:                                    # pad batch, never a giant block
        s = jnp.pad(s, ((0, b_pad - b), (0, 0)))
        a = jnp.pad(a, ((0, b_pad - b), (0, 0)))
    n_blocks = b_pad // tb

    kernel = functools.partial(
        cnet_kernel, s_dim=s_dim, a_dim=a_dim,
        off_wa=meta["off_wa"], off_bias=meta["off_bias"],
        off_wo=meta["off_wo"], off_bo=meta["off_bo"])

    out = pl.pallas_call(
        kernel,
        out_shape=jax.ShapeDtypeStruct((n_blocks, 1, tb), jnp.float32),
        grid=(n_blocks,),
        in_specs=[
            pl.BlockSpec((tb, s_dim), lambda i: (i, 0)),    # batch-tiled s
            pl.BlockSpec((tb, a_dim), lambda i: (i, 0)),    # batch-tiled a
            pl.BlockSpec(slab.shape, lambda i: (0, 0)),     # resident weights
        ],
        out_specs=pl.BlockSpec((None, 1, tb), lambda i: (i, 0, 0)),
        compiler_params=pltpu.CompilerParams(
            dimension_semantics=("parallel",)),
    )(s, a, slab)

    return out.reshape(b_pad, 1)[:b]


def init_params(key, s_dim, a_dim, hidden=HIDDEN):
    """Deterministic init mimicking nn.Linear default (uniform +-1/sqrt(fan_in))."""
    k = jax.random.split(key, 6)

    def lin(kw, kb, fan_in, fan_out):
        bound = 1.0 / jnp.sqrt(fan_in)
        w = jax.random.uniform(kw, (fan_out, fan_in), jnp.float32, -bound, bound)
        b = jax.random.uniform(kb, (fan_out,), jnp.float32, -bound, bound)
        return w, b

    ws, bs = lin(k[0], k[1], s_dim, hidden)
    wa, ba = lin(k[2], k[3], a_dim, hidden)
    wo, bo = lin(k[4], k[5], hidden, 1)
    return {"Ws": ws, "bs": bs, "Wa": wa, "ba": ba, "Wo": wo, "bo": bo}


def _reference(s, a, p):
    net = jnp.maximum(s @ p["Ws"].T + p["bs"] + a @ p["Wa"].T + p["ba"], 0.0)
    return net @ p["Wo"].T + p["bo"]


if __name__ == "__main__":
    key = jax.random.PRNGKey(0)
    k_s, k_a, k_p, k_s2, k_a2 = jax.random.split(key, 5)

    B, S_DIM, A_DIM = 8, 16, 4
    s = jax.random.normal(k_s, (B, S_DIM), jnp.float32)
    a = jax.random.normal(k_a, (B, A_DIM), jnp.float32)
    params = init_params(k_p, S_DIM, A_DIM)

    # Pack weights once (hoisted out of the per-call path).
    slab, meta = pack_params(params)

    fwd = jax.jit(lambda s_, a_, slab_: cnet_forward(s_, a_, slab_, meta))
    out = fwd(s, a, slab)
    jax.block_until_ready(out)

    ref = _reference(s, a, params)
    assert out.shape == (B, 1)
    assert jnp.allclose(out, ref, atol=1e-4, rtol=1e-4)

    # Second check: unaligned batch -> padding + multi-block grid path.
    B2 = 20
    s2 = jax.random.normal(k_s2, (B2, S_DIM), jnp.float32)
    a2 = jax.random.normal(k_a2, (B2, A_DIM), jnp.float32)
    fwd2 = jax.jit(lambda s_, a_, slab_: cnet_forward(s_, a_, slab_, meta,
                                                      batch_tile=8))
    out2 = fwd2(s2, a2, slab)
    jax.block_until_ready(out2)
    ref2 = _reference(s2, a2, params)
    assert out2.shape == (B2, 1)
    assert jnp.allclose(out2, ref2, atol=1e-4, rtol=1e-4)

    print("KERNEL_OK")
</pallas_src>

<mosaic_0001>
module attributes {stable_mosaic.version = 11 : i64} {
  func.func @cnet_kernel(%arg0: i32, %arg1: memref<8x16xf32, #tpu.memory_space<vmem>>, %arg2: memref<8x4xf32, #tpu.memory_space<vmem>>, %arg3: memref<48x30xf32, #tpu.memory_space<vmem>>, %arg4: memref<1x1x8xf32, #tpu.memory_space<vmem>>) attributes {dimension_semantics = [#tpu.dimension_semantics<parallel>], iteration_bounds = array<i64: 1>, scalar_prefetch = 0 : i64, scratch_operands = 0 : i64, tpu.core_type = #tpu.core_type<tc>, window_params = [{transform_indices = @transform_0, window_bounds = array<i64: 8, 16>}, {transform_indices = @transform_1, window_bounds = array<i64: 8, 4>}, {pipeline_mode = #tpu.pipeline_mode<synchronous>, transform_indices = @transform_2, window_bounds = array<i64: 48, 30>}, {transform_indices = @transform_3, window_bounds = array<i64: 1, 1, 8>}]} {
    %c0 = arith.constant 0 : index
    %c0_0 = arith.constant 0 : index
    %0 = vector.load %arg3[%c0, %c0_0] : memref<48x30xf32, #tpu.memory_space<vmem>>, vector<16x30xf32>
    %c16 = arith.constant 16 : index
    %c0_1 = arith.constant 0 : index
    %1 = vector.load %arg3[%c16, %c0_1] : memref<48x30xf32, #tpu.memory_space<vmem>>, vector<4x30xf32>
    %c24 = arith.constant 24 : index
    %c0_2 = arith.constant 0 : index
    %2 = vector.load %arg3[%c24, %c0_2] : memref<48x30xf32, #tpu.memory_space<vmem>>, vector<1x30xf32>
    %c32 = arith.constant 32 : index
    %c0_3 = arith.constant 0 : index
    %3 = vector.load %arg3[%c32, %c0_3] : memref<48x30xf32, #tpu.memory_space<vmem>>, vector<1x30xf32>
    %c40 = arith.constant 40 : index
    %c0_4 = arith.constant 0 : index
    %4 = vector.load %arg3[%c40, %c0_4] : memref<48x30xf32, #tpu.memory_space<vmem>>, vector<1x1xf32>
    %c0_5 = arith.constant 0 : index
    %c0_6 = arith.constant 0 : index
    %5 = vector.load %arg1[%c0_5, %c0_6] : memref<8x16xf32, #tpu.memory_space<vmem>>, vector<8x16xf32>
    %c0_7 = arith.constant 0 : index
    %c0_8 = arith.constant 0 : index
    %6 = vector.load %arg2[%c0_7, %c0_8] : memref<8x4xf32, #tpu.memory_space<vmem>>, vector<8x4xf32>
    %cst = arith.constant dense<0.000000e+00> : vector<8x30xf32>
    %7 = tpu.matmul %5, %0, %cst {dimension_numbers = #tpu.dot_dimension_numbers<[1], [0], [0], [1], [0, 0, 1, 1], [], []>} : vector<8x16xf32>, vector<16x30xf32>, vector<8x30xf32> -> vector<8x30xf32>
    %cst_9 = arith.constant dense<0.000000e+00> : vector<8x30xf32>
    %8 = tpu.matmul %6, %1, %cst_9 {dimension_numbers = #tpu.dot_dimension_numbers<[1], [0], [0], [1], [0, 0, 1, 1], [], []>} : vector<8x4xf32>, vector<4x30xf32>, vector<8x30xf32> -> vector<8x30xf32>
    %9 = arith.addf %7, %8 : vector<8x30xf32>
    %10 = vector.broadcast %2 : vector<1x30xf32> to vector<8x30xf32>
    %11 = arith.addf %9, %10 : vector<8x30xf32>
    %cst_10 = arith.constant 0.000000e+00 : f32
    %12 = vector.broadcast %cst_10 : f32 to vector<8x30xf32>
    %13 = arith.maximumf %11, %12 : vector<8x30xf32>
    %cst_11 = arith.constant dense<0.000000e+00> : vector<1x8xf32>
    %14 = tpu.matmul %3, %13, %cst_11 {dimension_numbers = #tpu.dot_dimension_numbers<[1], [1], [0], [0], [0, 0, 1, 0], [], []>} : vector<1x30xf32>, vector<8x30xf32>, vector<1x8xf32> -> vector<1x8xf32>
    %15 = vector.broadcast %4 : vector<1x1xf32> to vector<1x8xf32>
    %16 = arith.addf %14, %15 : vector<1x8xf32>
    %c0_12 = arith.constant 0 : index
    %c0_13 = arith.constant 0 : index
    %c0_14 = arith.constant 0 : index
    %17 = vector.load %arg4[%c0_12, %c0_13, %c0_14] : memref<1x1x8xf32, #tpu.memory_space<vmem>>, vector<1x1x8xf32>
    %18 = vector.shape_cast %17 : vector<1x1x8xf32> to vector<1x8xf32>
    %19 = vector.shape_cast %16 : vector<1x8xf32> to vector<1x1x8xf32>
    tpu.vector_store %arg4[%c0_12, %c0_13, %c0_14], %19 {strides = array<i32>} : memref<1x1x8xf32, #tpu.memory_space<vmem>>, vector<1x1x8xf32>,
    return
  }
  func.func @transform_0(%arg0: i32) -> (i32, i32) {
    %c0_i32 = arith.constant 0 : i32
    %c0_i32_0 = arith.constant 0 : i32
    return %arg0, %c0_i32 : i32, i32
  }
  func.func @transform_1(%arg0: i32) -> (i32, i32) {
    %c0_i32 = arith.constant 0 : i32
    %c0_i32_0 = arith.constant 0 : i32
    return %arg0, %c0_i32 : i32, i32
  }
  func.func @transform_2(%arg0: i32) -> (i32, i32) {
    %c0_i32 = arith.constant 0 : i32
    %c0_i32_0 = arith.constant 0 : i32
    %c0_i32_1 = arith.constant 0 : i32
    return %c0_i32, %c0_i32_0 : i32, i32
  }
  func.func @transform_3(%arg0: i32) -> (i32, i32, i32) {
    %c0_i32 = arith.constant 0 : i32
    %c0_i32_0 = arith.constant 0 : i32
    %c0_i32_1 = arith.constant 0 : i32
    return %arg0, %c0_i32, %c0_i32_0 : i32, i32, i32
  }
}

</mosaic_0001>

<bundles_post_ra>
// kernel: _lambda_.1
= control target key start
LH: loop header
LB: loop body
LE: loop exit
PB: predicated region body
PF: predicated region fallthrough
CT: control target
= control target key end

     0   :  { %vm27_vm0 = vcmask 1043456   ;;  %v336_v2 = vmov 0.0   ;;  %vm23_vm1 = vcmask 31744   ;;  %vm337_vm2 = vmmov 0   ;;  %s387_s0 = inlined_call_operand.vmem [shape: f32[8,16], index: 0, kind: input, shape index: {}]   ;;  %s388_s1 = inlined_call_operand.vmem [shape: f32[8,4], index: 1, kind: input, shape index: {}]   ;;  %s389_s2 = inlined_call_operand.vmem [shape: f32[48,30], index: 2, kind: input, shape index: {}]   ;;  %s390_s3 = inlined_call_operand.hbm [shape: f32[1,1,8], index: 3, kind: output, shape index: {}]  }
   0x1   :  { %v17_v0 = vld [vmem:[%s389_s2 + $0x10] sm:$0xf]  ;;  %v16_v1 = vld [vmem:[%s389_s2 + $0x8] sm:$0xff]  ;;  %292 = vmatprep.subr.mxu0 %v336_v2  ;;  %297 = vmatprep.subr.mxu1 %v336_v2  ;;  %v22_v3 = vld [vmem:[%s388_s1] sm:$0xff] }
   0x2   :  { %293 = vmatpush3.msk.msra.mxu0 %vm27_vm0, %v17_v0  ;;  %294 = vmatprep.mubr.msk.f32.mxu0 %vm337_vm2, %v336_v2  ;;  %v15_v4 = vld [vmem:[%s389_s2] sm:$0xff] }
   0x3   :  { %8 = vsyncpa [#allocation3], 0  ;;  %298 = vmatpush3.msra.mxu1 %v16_v1  ;;  %295 = vmatmul.mubr.msk.f32.vlgmr.msra.gmra.mxu0 %vm23_vm1, %v22_v3  ;;  %v21_v5 = vld [vmem:[%s387_s0] sm:$0xff]  ;;  %vm101_vm3 = vcmask 130048   ;;  %v20_v6 = vld [vmem:[%s389_s2 + $0x28] sm:$0x1] }
   0x4   :  { %299 = vmatprep.subr.mxu1 %v336_v2  ;;  %301 = vmatprep.mubr.msk.f32.mxu1 %vm337_vm2, %v336_v2  ;;  %v338_v7 = vmov 0   ;;  %v282_v10 = vld [vmem:[%s389_s2 + $0x18] ss:$0 sm:$0xff]  ;;  %vm186_vm4 = vcmask 244736   ;;  %v19_v16 = vld [vmem:[%s389_s2 + $0x20] sm:$0x1] }
   0x5   :  { %300 = vmatpush3.msra.mxu1 %v15_v4  ;;  %304 = vmatprep.subr.mxu0 %v336_v2  ;;  %s339_s26 = smov [#allocation2]   ;;  %vm263_vm5 = vcmask 57344  }
   0x6   :  { %302 = vmatmul.mubr.msk.f32.vlgmr.msra.gmra.mxu1 %vm101_vm3, %v21_v5  ;;  %306 = vmatprep.mubr.msk.f32.mxu0 %vm337_vm2, %v336_v2  ;;  %s271_s27 = sshll.u32 %s339_s26, 4  ;;  %s272_s27 = int_to_ptr.vmem [resolvable:$true] %s271_s27 }
   0x7   :  { %313 = vset.pattern.permute.xlu0 %v338_v7  ;;  %s314_s28 = scalar_lea.vmem %s272_s27, 16  ;;  %s318_s29 = scalar_lea.vmem %s272_s27, 32 }
   0x8   :  { %183 = vperm.xlu0 %313, %v20_v6   ;;  %p315_p0 = scmp.ne.s32.totalorder %s272_s27, %s314_s28  ;;  %p319_p1 = scmp.lt.s32.totalorder %s272_s27, %s272_s27 }
   0x9   :  { %p320_p2 = scmp.lt.s32.totalorder %s318_s29, %s314_s28 }
   0xb   :  { %p321_p3 = por %p320_p2, %p319_p1 }
   0xd   :  { %p322_p4 = pnand %p321_p3, %p315_p0 }
  0x83   :  { %v184_v17 = vpop.permute.xlu0 %183 }
  0xc3   :  { %v97_v8 = vpop.f32.mrf.mxu0 }
  0xc5   :  { %v296_v9 = vpop.f32.mrf.mxu0 }
  0xc6   :  { %v171_v11 = vpop.f32.mrf.mxu1 }
  0xc7   :  { %v172_v12 = vadd.f32 %v171_v11, %v97_v8 }
  0xc8   :  { %v303_v13 = vpop.f32.mrf.mxu1 }
  0xc9   :  { %v179_v14 = vadd.f32 %v282_v10, %v172_v12 }
  0xcb   :  { %v180_v15 = vmax.f32 %v179_v14, 0.0 }
  0xcd   :  { %305 = vmatpush3.xpose.msk.msra.mxu0 %vm186_vm4, %v180_v15 }
  0xd0   :  { %307 = vmatmul.mubr.msk.f32.vlgmr.msra.gmra.mxu0 %vm186_vm4, %v19_v16 }
 0x190   :  { %v259_v18 = vpop.f32.mrf.mxu0 }
 0x191   :  { %v260_v19 = vadd.f32 %v259_v18, %v184_v17 }
 0x192   :  { %v308_v20 = vpop.f32.mrf.mxu0 }
 0x193   :  { %264 = vst.msk [vmem:[#allocation2] sm:$0x1] %vm263_vm5, %v260_v19 }
 0x194   :  { %325 = shalt.err (!%p322_p4)
}
 0x195   :  { %274 = dma.vmem_to_hbm [thread:$0]  %s272_s27, 16, %s390_s3, [#allocation3]  }
 0x196   :  { %334 = dma.done.wait [#allocation3], 16  }
 0x197   :  { %335 = vsyncadd [#allocation3], 4294967280 }
 0x198   :  { %278 = vsyncpa [#allocation3], 1 }

</bundles_post_ra>
